<compile_context>
chip_gen: v7x
topology: tpu7x:2x2x1
jax: 0.10.0
libtpu: 0.0.40
codegen_flags: <defaults>
</compile_context>

<pallas_src>
import jax
import jax.numpy as jnp
from jax.experimental import pallas as pl
from jax.experimental.pallas import tpu as pltpu

_BN_EPS = 1e-5


# ---------------------------------------------------------------------------
# Kernel
# ---------------------------------------------------------------------------
def _discriminator_kernel(x_ref, w_ref, b_ref, o_ref):
    # x_ref: (TILE_B, dim)   w_ref: (1, dim)   b_ref: (1, 1)   o_ref: (TILE_B, 1)
    x = x_ref[...].astype(jnp.float32)                    # x.float()
    # Folded Linear/BN stack: per-row dot product with the folded weight row.
    # VPU multiply + XLU lane reduction instead of a 1-column MXU matmul.
    logits = jnp.sum(x * w_ref[...], axis=-1, keepdims=True) + b_ref[...]
    # Final Sigmoid, scaled by 100 (LeakyReLU(True)/Dropout are identity in eval).
    o_ref[...] = 100.0 * (1.0 / (1.0 + jnp.exp(-logits)))


# ---------------------------------------------------------------------------
# Parameter init (mirrors the PyTorch module's shapes / eval-mode state)
# ---------------------------------------------------------------------------
def init_discriminator_params(key, dim):
    """Linear weights ~ U(-1/sqrt(fan_in), 1/sqrt(fan_in)) (PyTorch-style),
    stored as (in_features, out_features). BatchNorm: gamma=1, beta=0,
    running_mean=0, running_var=1."""
    h1, h2 = dim // 4, dim // 8
    keys = jax.random.split(key, 6)

    def lin(kw, kb, fan_in, fan_out):
        bound = 1.0 / jnp.sqrt(jnp.float32(fan_in))
        w = jax.random.uniform(kw, (fan_in, fan_out), jnp.float32, -bound, bound)
        b = jax.random.uniform(kb, (1, fan_out), jnp.float32, -bound, bound)
        return w, b

    w1, b1 = lin(keys[0], keys[1], dim, h1)
    w2, b2 = lin(keys[2], keys[3], h1, h2)
    w3, b3 = lin(keys[4], keys[5], h2, 1)

    def bn(f):
        return (jnp.ones((1, f), jnp.float32),   # gamma
                jnp.zeros((1, f), jnp.float32),  # beta
                jnp.zeros((1, f), jnp.float32),  # running_mean
                jnp.ones((1, f), jnp.float32))   # running_var

    g1, be1, rm1, rv1 = bn(h1)
    g2, be2, rm2, rv2 = bn(h2)

    return dict(
        w1=w1, b1=b1, g1=g1, be1=be1, rm1=rm1, rv1=rv1,
        w2=w2, b2=b2, g2=g2, be2=be2, rm2=rm2, rv2=rv2,
        w3=w3, b3=b3,
    )


# ---------------------------------------------------------------------------
# Wrapper: fold params, tile the batch, call the kernel
# ---------------------------------------------------------------------------
def _fold_params(params):
    """Fold BN (inference affine) into each Linear, then compose all layers
    into a single (dim, 1) weight column + (1, 1) bias. Exact up to f32
    re-association; LeakyReLU(slope=1.0) and eval-mode Dropout are identity."""
    s1 = params["g1"] * jax.lax.rsqrt(params["rv1"] + _BN_EPS)
    t1 = params["be1"] - params["rm1"] * s1
    s2 = params["g2"] * jax.lax.rsqrt(params["rv2"] + _BN_EPS)
    t2 = params["be2"] - params["rm2"] * s2

    a1 = params["w1"] * s1                      # (dim, dim/4)
    c1 = params["b1"] * s1 + t1                 # (1, dim/4)
    a2 = params["w2"] * s2                      # (dim/4, dim/8)
    c2 = params["b2"] * s2 + t2                 # (1, dim/8)

    wf = a1 @ (a2 @ params["w3"])               # (dim, 1)
    bf = (c1 @ a2 + c2) @ params["w3"] + params["b3"]   # (1, 1)

    dim = params["w1"].shape[0]
    return wf.reshape(1, dim).astype(jnp.float32), bf.astype(jnp.float32)


def _pick_tile_b(B, dim):
    """Batch tile: big enough to amortize per-step overhead, small enough that
    the double-buffered x tile stays well under the 32 MiB scoped-VMEM budget
    (safe for v7x's 64 MiB physical VMEM as well as v5e/v6e)."""
    budget_bytes = 8 * 1024 * 1024                         # one x tile buffer
    max_rows = max(8, (budget_bytes // (dim * 4)) // 8 * 8)
    b_aligned = ((B + 7) // 8) * 8
    return max(8, min(1024, max_rows, b_aligned))


def discriminator_forward(x, params, *, tile_b=None):
    """Full Discriminator forward (eval mode) as a single tiled Pallas kernel.

    x: (B, dim) array (any float/int dtype; cast to f32 in-kernel like x.float()).
    Returns: (B,) float32, matching `output.view(-1)`.
    """
    B, dim = x.shape
    w_row, b_scalar = _fold_params(params)     # (1, dim), (1, 1)

    if tile_b is None:
        tile_b = _pick_tile_b(B, dim)
    tile_b = max(8, (tile_b // 8) * 8)

    n_blocks = pl.cdiv(B, tile_b)
    b_pad = n_blocks * tile_b
    if b_pad != B:
        x = jnp.pad(x, ((0, b_pad - B), (0, 0)))

    itemsize = jnp.dtype(x.dtype).itemsize
    cost = pl.CostEstimate(
        flops=2 * b_pad * dim + 6 * b_pad,
        transcendentals=b_pad,
        bytes_accessed=b_pad * dim * itemsize + b_pad * 4 + dim * 4 + 4,
    )

    out = pl.pallas_call(
        _discriminator_kernel,
        out_shape=jax.ShapeDtypeStruct((b_pad, 1), jnp.float32),
        grid=(n_blocks,),
        in_specs=[
            pl.BlockSpec((tile_b, dim), lambda i: (i, 0)),   # x: streamed
            pl.BlockSpec((1, dim), lambda i: (0, 0)),        # folded weight row
            pl.BlockSpec((1, 1), lambda i: (0, 0)),          # folded bias
        ],
        out_specs=pl.BlockSpec((tile_b, 1), lambda i: (i, 0)),
        compiler_params=pltpu.CompilerParams(
            dimension_semantics=("parallel",),               # megacore on v7x
            vmem_limit_bytes=32 * 1024 * 1024,
        ),
        cost_estimate=cost,
    )(x, w_row, b_scalar)

    return out[:B, 0]


# ---------------------------------------------------------------------------
# Pure-JAX layer-by-layer reference (mirrors the PyTorch module exactly)
# ---------------------------------------------------------------------------
def _reference_forward(x, params):
    h = x.astype(jnp.float32)
    h = h @ params["w1"] + params["b1"]
    h = jnp.where(h >= 0, h, 1.0 * h)                     # LeakyReLU(slope=1.0)
    h = (h - params["rm1"]) / jnp.sqrt(params["rv1"] + _BN_EPS) * params["g1"] + params["be1"]
    h = h @ params["w2"] + params["b2"]
    h = jnp.where(h >= 0, h, 1.0 * h)
    h = (h - params["rm2"]) / jnp.sqrt(params["rv2"] + _BN_EPS) * params["g2"] + params["be2"]
    h = h @ params["w3"] + params["b3"]
    return (100.0 * jax.nn.sigmoid(h)).reshape(-1)


if __name__ == "__main__":
    key = jax.random.PRNGKey(0)
    k_x, k_p = jax.random.split(key)

    # Small shapes: dim divisible by 8 (dim/4, dim/8 layers); B deliberately NOT
    # a multiple of the tile so padding + multi-block grid are exercised.
    B, DIM = 20, 32
    x = jax.random.normal(k_x, (B, DIM), jnp.float32)
    params = init_discriminator_params(k_p, DIM)

    out = discriminator_forward(x, params, tile_b=8)      # grid of 3 tiles
    jax.block_until_ready(out)

    ref = _reference_forward(x, params)
    assert out.shape == (B,)
    assert jnp.allclose(out, ref, atol=1e-3, rtol=1e-4), (out, ref)

    # Also check the auto-tiled path (single block, B padded to a multiple of 8).
    out2 = discriminator_forward(x, params)
    jax.block_until_ready(out2)
    assert jnp.allclose(out2, ref, atol=1e-3, rtol=1e-4), (out2, ref)

    print("KERNEL_OK")
</pallas_src>

<mosaic_0001>
module attributes {stable_mosaic.version = 11 : i64} {
  func.func @_discriminator_kernel(%arg0: i32, %arg1: memref<8x32xf32, #tpu.memory_space<vmem>>, %arg2: memref<1x32xf32, #tpu.memory_space<vmem>>, %arg3: memref<1x1xf32, #tpu.memory_space<vmem>>, %arg4: memref<8x1xf32, #tpu.memory_space<vmem>>) attributes {dimension_semantics = [#tpu.dimension_semantics<parallel>], iteration_bounds = array<i64: 3>, scalar_prefetch = 0 : i64, scratch_operands = 0 : i64, tpu.core_type = #tpu.core_type<tc>, window_params = [{transform_indices = @transform_0, window_bounds = array<i64: 8, 32>}, {pipeline_mode = #tpu.pipeline_mode<synchronous>, transform_indices = @transform_1, window_bounds = array<i64: 1, 32>}, {pipeline_mode = #tpu.pipeline_mode<synchronous>, transform_indices = @transform_2, window_bounds = array<i64: 1, 1>}, {transform_indices = @transform_3, window_bounds = array<i64: 8, 1>}]} {
    %c0 = arith.constant 0 : index
    %c0_0 = arith.constant 0 : index
    %0 = vector.load %arg1[%c0, %c0_0] : memref<8x32xf32, #tpu.memory_space<vmem>>, vector<8x32xf32>
    %c0_1 = arith.constant 0 : index
    %c0_2 = arith.constant 0 : index
    %1 = vector.load %arg2[%c0_1, %c0_2] : memref<1x32xf32, #tpu.memory_space<vmem>>, vector<1x32xf32>
    %2 = vector.broadcast %1 : vector<1x32xf32> to vector<8x32xf32>
    %3 = arith.mulf %0, %2 : vector<8x32xf32>
    %cst = arith.constant dense<0.000000e+00> : vector<8xf32>
    %4 = vector.multi_reduction <add>, %3, %cst [1] : vector<8x32xf32> to vector<8xf32>
    %5 = vector.shape_cast %4 : vector<8xf32> to vector<8x1xf32>
    %c0_3 = arith.constant 0 : index
    %c0_4 = arith.constant 0 : index
    %6 = vector.load %arg3[%c0_3, %c0_4] : memref<1x1xf32, #tpu.memory_space<vmem>>, vector<1x1xf32>
    %7 = vector.broadcast %6 : vector<1x1xf32> to vector<8x1xf32>
    %8 = arith.addf %5, %7 : vector<8x1xf32>
    %cst_5 = arith.constant 0.000000e+00 : f32
    %9 = vector.broadcast %cst_5 : f32 to vector<8x1xf32>
    %10 = arith.subf %9, %8 : vector<8x1xf32>
    %11 = math.exp %10 : vector<8x1xf32>
    %cst_6 = arith.constant 1.000000e+00 : f32
    %12 = vector.broadcast %cst_6 : f32 to vector<8x1xf32>
    %13 = arith.addf %12, %11 : vector<8x1xf32>
    %cst_7 = arith.constant 1.000000e+00 : f32
    %14 = vector.broadcast %cst_7 : f32 to vector<8x1xf32>
    %15 = arith.divf %14, %13 : vector<8x1xf32>
    %cst_8 = arith.constant 1.000000e+02 : f32
    %16 = vector.broadcast %cst_8 : f32 to vector<8x1xf32>
    %17 = arith.mulf %16, %15 : vector<8x1xf32>
    %c0_9 = arith.constant 0 : index
    %c0_10 = arith.constant 0 : index
    %18 = vector.load %arg4[%c0_9, %c0_10] : memref<8x1xf32, #tpu.memory_space<vmem>>, vector<8x1xf32>
    tpu.vector_store %arg4[%c0_9, %c0_10], %17 {strides = array<i32>} : memref<8x1xf32, #tpu.memory_space<vmem>>, vector<8x1xf32>,
    return
  }
  func.func @transform_0(%arg0: i32) -> (i32, i32) {
    %c0_i32 = arith.constant 0 : i32
    %c0_i32_0 = arith.constant 0 : i32
    return %arg0, %c0_i32 : i32, i32
  }
  func.func @transform_1(%arg0: i32) -> (i32, i32) {
    %c0_i32 = arith.constant 0 : i32
    %c0_i32_0 = arith.constant 0 : i32
    %c0_i32_1 = arith.constant 0 : i32
    return %c0_i32, %c0_i32_0 : i32, i32
  }
  func.func @transform_2(%arg0: i32) -> (i32, i32) {
    %c0_i32 = arith.constant 0 : i32
    %c0_i32_0 = arith.constant 0 : i32
    %c0_i32_1 = arith.constant 0 : i32
    return %c0_i32, %c0_i32_0 : i32, i32
  }
  func.func @transform_3(%arg0: i32) -> (i32, i32) {
    %c0_i32 = arith.constant 0 : i32
    %c0_i32_0 = arith.constant 0 : i32
    return %arg0, %c0_i32 : i32, i32
  }
}

</mosaic_0001>

<bundles_post_ra>
// kernel: tpu_custom_call.1
= control target key start
LH: loop header
LB: loop body
LE: loop exit
PB: predicated region body
PF: predicated region fallthrough
CT: control target
= control target key end

     0   :  { %s538_s0 = inlined_call_operand.hbm [shape: f32[24,32], index: 0, kind: input, shape index: {}]   ;;  %s539_s1 = inlined_call_operand.vmem [shape: f32[1,32], index: 1, kind: input, shape index: {}]   ;;  %s540_s2 = inlined_call_operand.<no memory space> [shape: f32[1,1], index: 2, kind: input, shape index: {}]   ;;  %s541_s3 = inlined_call_operand.vmem [shape: f32[24,1], index: 3, kind: output, shape index: {}]  }
   0x1   :  { %v8_v0 = vstv %s540_s2 }
   0x2   :  { %9 = vst [vmem:[#allocation2] sm:$0x1] %v8_v0 }
   0x3   :  { %10 = vsyncpa [#allocation4], 0 }
   0x4   :  { %12 = vsyncpa [#allocation4 + $0x1], 0  ;;  %s428_s14 = smov 0   ;;  %s430_s15 = smov 0  }
   0x5   :  { %s432_s16 = smov 0   ;;  %s434_s17 = smov 0  }
   0x6 LB: > { %s447_s2 = sadd.s32 4294967295, %s402_s17   ;;  %s450_s18 = sadd.s32 1, %s402_s17   ;;  %s402_s17 = sphi %s434_s17, %s549_s17   ;;  %s398_s16 = sphi %s432_s16, %s548_s16   ;;  %s394_s15 = sphi %s430_s15, %s547_s15   ;;  %s390_s14 = sphi %s428_s14, %s546_s14  }
   0x7   : > { %s22_s19 = ssub.s32 %s402_s17, %s450_s18  ;;  %s25_s20 = sadd.s32 1, %s398_s16 }
   0x8   : > { %p23_p0 = scmp.eq.s32.totalorder %s22_s19, 0  ;;  %p32_p1 = scmp.ne.s32.totalorder %s398_s16, %s394_s15 }
   0x9   : > { %p33_p2 = scmp.eq.s32.totalorder %s402_s17, 0  ;;  %p38_p3 = scmp.ne.s32.totalorder %s394_s15, %s390_s14 }
   0xa   : > { %s460_s21 = scalar_select %p23_p0, %s398_s16, %s25_s20  }
   0xb   : > { %p34_p4 = por %p33_p2, %p32_p1  ;;  %p39_p5 = scmp.eq.s32.totalorder %s447_s2, 0 }
   0xc   : > { %p301_p6 = scmp.lt.s32.totalorder %s402_s17, 3  ;;  %s136_s23 = sand.u32 1, %s398_s16  }
   0xd   : > { %p464_p7 = por %p39_p5, %p38_p3  ;;  %s286_s24 = sshll.u32 %s136_s23, 3 }
   0xe   : > { %s287_s25 = sshll.u32 %s402_s17, 7  ;;  %s140_s29 = scalar_lea.vmem [#allocation3], %s286_s24 }
   0xf   : > { %s473_s28 = scalar_lea.hbm %s538_s0, %s287_s25  ;;  %s147_s30 = sshll.u32 %s140_s29, 4  ;;  %s475_s30 = int_to_ptr.vmem [resolvable:$true] %s147_s30 }
  0x10   : > { %p477_p8 = pnand %p301_p6, %p34_p4  ;;  %s137_s5 = scalar_lea.sflag [#allocation4], %s136_s23 }
  0x11   : > { %s338_s6 = scalar_lea.hbm %s473_s28, 128  ;;  %s343_s9 = scalar_lea.hbm %s538_s0, 384 }
  0x12   : > { %p339_p11 = scmp.ne.s32.totalorder %s473_s28, %s338_s6  ;;  %p340_p12 = pneg %p477_p8 }
  0x13   : > { %p344_p1 = scmp.lt.u32.totalorder %s473_s28, %s538_s0  ;;  %p345_p2 = scmp.lt.u32.totalorder %s343_s9, %s338_s6 }
  0x14   : > { %p341_p13 = pnand %p340_p12, %p339_p11  ;;  %p347_p4 = scmp.lt.u32.totalorder %s338_s6, %s473_s28 }
  0x15   : > { %p346_p3 = por %p345_p2, %p344_p1 }
  0x16   : > { %p342_p0 = pneg %p341_p13 }
  0x17   : > { %p348_p5 = por %p347_p4, %p346_p3 }
  0x19   : > { %p349_p6 = pnand %p348_p5, %p342_p0 }
  0x1b   : > { %352 = shalt.err (!%p349_p6)
}
  0x1c   : > { %s353_s12 = scalar_lea.vmem %s475_s30, 128  ;;  %s404_s13 = smov [#allocation3]  }
  0x1d   : > { %p354_p11 = scmp.ne.s32.totalorder %s475_s30, %s353_s12  ;;  %s358_s14 = sshll.u32 %s404_s13, 4  ;;  %s359_s14 = int_to_ptr.vmem [resolvable:$false] %s358_s14 }
  0x1e   : > { %s360_s19 = scalar_lea.vmem %s359_s14, 256  ;;  %p361_p10 = scmp.lt.s32.totalorder %s475_s30, %s359_s14 }
  0x1f   : > { %p356_p13 = pnand %p354_p11, %p340_p12  ;;  %p362_p1 = scmp.lt.s32.totalorder %s360_s19, %s353_s12 }
  0x21   : > { %p357_p9 = pneg %p356_p13  ;;  %p363_p2 = por %p362_p1, %p361_p10 }
  0x23   : > { %p364_p3 = pnand %p363_p2, %p357_p9 }
  0x25   : > { %367 = shalt.err (!%p364_p3)
}
  0x26   : > { %300 = dma.hbm_to_vmem [thread:$0]  (!%p477_p8), %s473_s28, 128, %s475_s30, %s137_s5  }
  0x27   : > { %p544_p0 = scmp.lt.s32.totalorder %s402_s17, 4  ;;  %p545_p4 = scmp.ge.s32.totalorder %s402_s17, 1 }
  0x29   : > { %p153_p12 = pnand %p545_p4, %p544_p0 }
  0x2a   : > { %s158_s20 = sand.u32 (!%p153_p12), 1, %s394_s15  }
  0x2b   : > { %156 = sbr.rel (%p153_p12) target bundleno = 230 (0xe6), region = 32  ;;  %s289_s23 = sshll.u32 (!%p153_p12), %s158_s20, 3 }
  0x2c   : > { %s159_s24 = scalar_lea.sflag (!%p153_p12), [#allocation4], %s158_s20  ;;  %s162_s25 = scalar_lea.vmem (!%p153_p12), [#allocation3], %s289_s23 }
  0x32   : > { %385 = dma.done.wait (%p464_p7), %s159_s24, 128  }
  0x33   : > { %387 = vsyncadd (%p464_p7), %s159_s24, 4294967168  ;;  %v188_v1 = vld [vmem:[%s162_s25] sm:$0xff]  ;;  %v291_v2 = vld [vmem:[%s539_s1] ss:$0 sm:$0xff]  ;;  %vm197_vm0 = vcmask 261120   ;;  %p184_p7 = scmp.lt.s32.totalorder %s447_s2, 2 }
  0x34   : > { %v196_v3 = vmul.f32 %v291_v2, %v188_v1  ;;  %v292_v5 = vld [vmem:[#allocation2] ss:$0 sm:$0xff]  ;;  %vm216_vm1 = vcmask 7168  }
  0x35   : > { %s551_s2 = smov (!%p184_p7, %s447_s2), 2 }
  0x36   : > { %v198_v4 = vsel %vm197_vm0, %v196_v3, 0.0  ;;  %s290_s17 = sshll.u32 %s551_s2, 3 }
  0x37   : > { %199 = vadd.xlane.f32.xlu0 %v198_v4  ;;  %s187_s29 = scalar_lea.vmem %s541_s3, %s290_s17 }
  0xc4   : > { %v200_v6 = vpop.xlane.xlu0 %199 }
  0xc5   : > { %v208_v7 = vadd.f32 %v292_v5, %v200_v6 }
  0xc7   : > { %v209_v8 = vsub.f32 0.0, %v208_v7 }
  0xc9   : > { %v210_v9 = vmul.f32 1.442695, %v209_v8 }
  0xcb   : > { %334 = vpow2.f32 %v210_v9 }
  0xd5   : > { %v335_v10 = vpop.eup %334 }
  0xd6   : > { %v212_v11 = vadd.f32 1.0, %v335_v10 }
  0xd8   : > { %336 = vrcp.f32 %v212_v11 }
  0xe2   : > { %v337_v12 = vpop.eup %336 }
  0xe3   : > { %v215_v13 = vmul.f32 100.0, %v337_v12 }
  0xe5   : > { %217 = vst.msk [vmem:[%s187_s29] sm:$0xff] %vm216_vm1, %v215_v13 }
  0xe6 PF: > { %p15_p8 = scmp.ge.s32.totalorder %s450_s18, 5   ;;  %s546_s14 = smov %s394_s15 }
  0xe7   : > { %s547_s15 = smov %s398_s16  ;;  %s548_s16 = smov %s460_s21 }
  0xe8   : > { %s549_s17 = smov %s450_s18  ;;  %17 = sbr.rel (!%p15_p8) target bundleno = 6 (0x6), region = 72 }
  0xef   :  { %237 = vsyncpa [#allocation4], 1 }
  0xf0   :  { %239 = vsyncpa [#allocation4 + $0x1], 1 }

</bundles_post_ra>
